<compile_context>
chip_gen: v5e
topology: v5e:2x2
jax: 0.10.0
libtpu: 0.0.40
codegen_flags: <defaults>
</compile_context>

<pallas_src>
import jax
import jax.numpy as jnp
from jax.experimental import pallas as pl
from jax.experimental.pallas import tpu as pltpu

# ----- model dims (PoseMLP(feat_dim=32, prev_action_size=8, pose_dim=8, output_dim=12))
FEAT_DIM = 32
POSE_DIM = 8
PREV_ACTION_N = 1
PREV_ACTION_SIZE = PREV_ACTION_N * 8
SIDE_DIM = POSE_DIM + PREV_ACTION_SIZE
HIDDEN = (64, 64)
OUT_DIM = 12
BN_EPS = 1e-5

# ----- packed layout constants
IN_W = 64                        # xin lanes: [feat(32) | pose(8) | prev_action(8) | 1 | 0*15]
ONE_COL = FEAT_DIM + SIDE_DIM    # 48: lane holding the constant 1 (feeds the bias rows)
H_PAD = 128                      # hidden 64 -> 128 lanes (keeps every slice 128-aligned)
OUT_PAD = 128                    # output 12 -> 128 lanes (lane-dense stores)
WX_ROWS = IN_W + H_PAD + H_PAD   # 320: stacked x-path weights of the 3 layers
WS_COLS = 3 * 128                # 384: per-layer side projections at 128-lane offsets
B_TILE_MAX = 1024


def _round_up(x, m):
    return (x + m - 1) // m * m


def _bdot(a, w_ref_val):
    # bf16 MXU operands, f32 accumulation.
    return jnp.dot(a.astype(jnp.bfloat16), w_ref_val, preferred_element_type=jnp.float32)


# --------------------------------------------------------------------------
# Kernel: 4 dots total.
#   sp  = xin @ Ws_slab            (side/pose/prev_action + bias for all 3 layers)
#   h1  = relu(relu(bn(feat)) @ W1x + sp[:,   0:128])
#   h2  = relu(h1 @ W2x            + sp[:, 128:256])
#   out =      h2 @ W3x            + sp[:, 256:384]
# BatchNorms (eval mode) are pre-folded into the slabs / bn rows.
# --------------------------------------------------------------------------
def _posemlp_kernel(xin_ref, bn_ref, wx_ref, ws_ref, out_ref):
    xin = xin_ref[...]                                                   # (bt, 64) f32
    # Side projections + biases for all three layers in one MXU pass.
    sp = _bdot(xin, ws_ref[...])                                         # (bt, 384) f32
    # relu(feat_bn(feat)); non-feat lanes have zero scale/shift -> 0.
    x = jnp.maximum(xin * bn_ref[0:1, :] + bn_ref[1:2, :], 0.0)          # (bt, 64)
    h = jnp.maximum(_bdot(x, wx_ref[0:IN_W, :]) + sp[:, 0:128], 0.0)     # (bt, 128)
    h = jnp.maximum(_bdot(h, wx_ref[IN_W:IN_W + H_PAD, :]) + sp[:, 128:256], 0.0)
    out_ref[...] = _bdot(h, wx_ref[IN_W + H_PAD:WX_ROWS, :]) + sp[:, 256:384]


def posemlp_forward(feat, pose, prev_action, packed):
    B = feat.shape[0]
    pa = prev_action.reshape(B, PREV_ACTION_SIZE).astype(jnp.float32)
    # Packed per-row input: [feat | pose | prev_action | 1 | zero-pad] -> (B, 64)
    xin = jnp.concatenate(
        [feat.astype(jnp.float32), pose.astype(jnp.float32), pa,
         jnp.ones((B, 1), jnp.float32),
         jnp.zeros((B, IN_W - ONE_COL - 1), jnp.float32)], axis=-1)

    bt = min(B_TILE_MAX, _round_up(max(B, 1), 8))
    Bp = _round_up(B, bt)
    if Bp != B:
        xin = jnp.pad(xin, ((0, Bp - B), (0, 0)))

    out = pl.pallas_call(
        _posemlp_kernel,
        out_shape=jax.ShapeDtypeStruct((Bp, OUT_PAD), jnp.float32),
        grid=(Bp // bt,),
        in_specs=[
            pl.BlockSpec((bt, IN_W), lambda i: (i, 0)),          # activations: batch-tiled
            pl.BlockSpec((8, IN_W), lambda i: (0, 0)),           # bn scale/shift rows (resident)
            pl.BlockSpec((WX_ROWS, H_PAD), lambda i: (0, 0)),    # x-path weight slab (resident)
            pl.BlockSpec((IN_W, WS_COLS), lambda i: (0, 0)),     # side-path weight slab (resident)
        ],
        out_specs=pl.BlockSpec((bt, OUT_PAD), lambda i: (i, 0)),
        compiler_params=pltpu.CompilerParams(dimension_semantics=("parallel",)),
    )(xin, packed["bn"], packed["wx"], packed["ws"])
    return out[:B, :OUT_DIM]


# --------------------------------------------------------------------------
# Deterministic parameter construction (synthetic; no checkpoint load).
# --------------------------------------------------------------------------
def _linear_init(key, fan_in, fan_out):
    kw, kb = jax.random.split(key)
    bound = 1.0 / jnp.sqrt(jnp.float32(fan_in))
    w = jax.random.uniform(kw, (fan_in, fan_out), jnp.float32, -bound, bound)
    b = jax.random.uniform(kb, (fan_out,), jnp.float32, -bound, bound)
    return w, b


def _bn_init(key, n):
    k1, k2 = jax.random.split(key)
    gamma = 1.0 + 0.1 * jax.random.normal(k1, (n,), jnp.float32)
    beta = 0.1 * jax.random.normal(k2, (n,), jnp.float32)
    rmean = 0.05 * jnp.arange(n, dtype=jnp.float32) / n
    rvar = 1.0 + 0.02 * jnp.arange(n, dtype=jnp.float32) / n
    return gamma, beta, rmean, rvar


def init_params(key):
    """Raw PoseMLP parameters (fc weights stored (fan_in, fan_out))."""
    keys = jax.random.split(key, 6)
    P = {"feat_bn": _bn_init(keys[0], FEAT_DIM)}
    mlp = (FEAT_DIM,) + HIDDEN + (OUT_DIM,)
    for i in range(3):
        P[f"w{i}"], P[f"b{i}"] = _linear_init(keys[1 + i], mlp[i] + SIDE_DIM, mlp[i + 1])
    for i in range(2):
        P[f"bn{i}"] = _bn_init(keys[4 + i], mlp[i + 1])
    return P


def _fold_bn(w, b, bn):
    gamma, beta, rmean, rvar = bn
    s = gamma * jax.lax.rsqrt(rvar + BN_EPS)
    return w * s[None, :], b * s + beta - rmean * s


def pack_params(P, weight_dtype=jnp.bfloat16):
    """Fold eval-mode BatchNorms and pack everything into 3 kernel slabs."""
    # TODO(synk): training-mode BatchNorm (batch statistics + running-stat update)
    # has no equivalent here; this packing assumes eval mode.
    mlp = (FEAT_DIM,) + HIDDEN + (OUT_DIM,)
    w = [P["w0"], P["w1"], P["w2"]]
    b = [P["b0"], P["b1"], P["b2"]]
    for i in range(2):                                 # bns[i] follows fcs[i]
        w[i], b[i] = _fold_bn(w[i], b[i], P[f"bn{i}"])

    # feat_bn (eval) -> scale / shift rows packed into one (8, 64) f32 ref.
    gamma, beta, rmean, rvar = P["feat_bn"]
    s0 = gamma * jax.lax.rsqrt(rvar + BN_EPS)
    t0 = beta - rmean * s0
    bn = jnp.zeros((8, IN_W), jnp.float32)
    bn = bn.at[0, :FEAT_DIM].set(s0).at[1, :FEAT_DIM].set(t0)

    # x-path weight slab (320, 128): rows 0:64 layer0 (xin lanes; only feat rows
    # nonzero), rows 64:192 layer1, rows 192:320 layer2. Hidden/out cols zero-padded to 128.
    wx = jnp.zeros((WX_ROWS, H_PAD), jnp.float32)
    wx = wx.at[0:FEAT_DIM, 0:mlp[1]].set(w[0][:FEAT_DIM])
    wx = wx.at[IN_W:IN_W + mlp[1], 0:mlp[2]].set(w[1][:mlp[1]])
    wx = wx.at[IN_W + H_PAD:IN_W + H_PAD + mlp[2], 0:OUT_DIM].set(w[2][:mlp[2]])

    # side-path weight slab (64, 384): rows are xin lanes; rows 32:48 hold the
    # pose/prev_action weight rows, row 48 (the constant-1 lane) holds the bias.
    # Layer i's columns start at 128*i (128-lane aligned slices in the kernel).
    ws = jnp.zeros((IN_W, WS_COLS), jnp.float32)
    for i in range(3):
        c = 128 * i
        ws = ws.at[FEAT_DIM:FEAT_DIM + SIDE_DIM, c:c + mlp[i + 1]].set(w[i][mlp[i]:])
        ws = ws.at[ONE_COL, c:c + mlp[i + 1]].set(b[i])

    return {"bn": bn, "wx": wx.astype(weight_dtype), "ws": ws.astype(weight_dtype)}


# --------------------------------------------------------------------------
# Pure-JAX reference (raw params, eval-mode BN, f32).
# --------------------------------------------------------------------------
def reference_forward(feat, pose, prev_action, P):
    B = feat.shape[0]
    pa = prev_action.reshape(B, PREV_ACTION_SIZE)

    def bn(x, p):
        gamma, beta, rmean, rvar = p
        return (x - rmean) * gamma * jax.lax.rsqrt(rvar + BN_EPS) + beta

    x = jax.nn.relu(bn(feat, P["feat_bn"]))
    for i in range(2):
        z = jnp.dot(jnp.concatenate([x, pose, pa], axis=-1), P[f"w{i}"]) + P[f"b{i}"]
        x = jax.nn.relu(bn(z, P[f"bn{i}"]))
    return jnp.dot(jnp.concatenate([x, pose, pa], axis=-1), P["w2"]) + P["b2"]


if __name__ == "__main__":
    key = jax.random.PRNGKey(0)
    kp, kf, kpose, kpa = jax.random.split(key, 4)
    P = init_params(kp)
    packed = pack_params(P)

    B = 2
    feat = jax.random.normal(kf, (B, FEAT_DIM), jnp.float32)
    pose = jax.random.normal(kpose, (B, POSE_DIM), jnp.float32)
    prev_action = jax.random.normal(kpa, (B, PREV_ACTION_N, 8), jnp.float32)

    out = jax.block_until_ready(posemlp_forward(feat, pose, prev_action, packed))
    ref = reference_forward(feat, pose, prev_action, P)

    assert out.shape == (B, OUT_DIM), out.shape
    # Tolerance sized for bf16 MXU operands (kernel) vs default-precision f32
    # reference; typical |diff| is O(1e-3) on O(0.5) outputs.
    assert jnp.allclose(out, ref, rtol=2e-2, atol=3e-2), (out, ref)
    print("KERNEL_OK")
</pallas_src>

<mosaic_0001>
module attributes {stable_mosaic.version = 11 : i64} {
  func.func @_posemlp_kernel(%arg0: i32, %arg1: memref<8x64xf32, #tpu.memory_space<vmem>>, %arg2: memref<8x64xf32, #tpu.memory_space<vmem>>, %arg3: memref<320x128xbf16, #tpu.memory_space<vmem>>, %arg4: memref<64x384xbf16, #tpu.memory_space<vmem>>, %arg5: memref<8x128xf32, #tpu.memory_space<vmem>>) attributes {dimension_semantics = [#tpu.dimension_semantics<parallel>], iteration_bounds = array<i64: 1>, scalar_prefetch = 0 : i64, scratch_operands = 0 : i64, tpu.core_type = #tpu.core_type<tc>, window_params = [{transform_indices = @transform_0, window_bounds = array<i64: 8, 64>}, {pipeline_mode = #tpu.pipeline_mode<synchronous>, transform_indices = @transform_1, window_bounds = array<i64: 8, 64>}, {pipeline_mode = #tpu.pipeline_mode<synchronous>, transform_indices = @transform_2, window_bounds = array<i64: 320, 128>}, {pipeline_mode = #tpu.pipeline_mode<synchronous>, transform_indices = @transform_3, window_bounds = array<i64: 64, 384>}, {transform_indices = @transform_4, window_bounds = array<i64: 8, 128>}]} {
    %c0 = arith.constant 0 : index
    %c0_0 = arith.constant 0 : index
    %0 = vector.load %arg1[%c0, %c0_0] : memref<8x64xf32, #tpu.memory_space<vmem>>, vector<8x64xf32>
    %c0_1 = arith.constant 0 : index
    %c0_2 = arith.constant 0 : index
    %1 = vector.load %arg4[%c0_1, %c0_2] : memref<64x384xbf16, #tpu.memory_space<vmem>>, vector<64x384xbf16>
    %2 = arith.truncf %0 : vector<8x64xf32> to vector<8x64xbf16>
    %cst = arith.constant dense<0.000000e+00> : vector<8x384xf32>
    %3 = tpu.matmul %2, %1, %cst {dimension_numbers = #tpu.dot_dimension_numbers<[1], [0], [0], [1], [0, 0, 1, 1], [], []>} : vector<8x64xbf16>, vector<64x384xbf16>, vector<8x384xf32> -> vector<8x384xf32>
    %c0_3 = arith.constant 0 : index
    %c0_4 = arith.constant 0 : index
    %4 = vector.load %arg2[%c0_3, %c0_4] : memref<8x64xf32, #tpu.memory_space<vmem>>, vector<1x64xf32>
    %5 = vector.broadcast %4 : vector<1x64xf32> to vector<8x64xf32>
    %6 = arith.mulf %0, %5 : vector<8x64xf32>
    %c1 = arith.constant 1 : index
    %c0_5 = arith.constant 0 : index
    %7 = vector.load %arg2[%c1, %c0_5] : memref<8x64xf32, #tpu.memory_space<vmem>>, vector<1x64xf32>
    %8 = vector.broadcast %7 : vector<1x64xf32> to vector<8x64xf32>
    %9 = arith.addf %6, %8 : vector<8x64xf32>
    %cst_6 = arith.constant 0.000000e+00 : f32
    %10 = vector.broadcast %cst_6 : f32 to vector<8x64xf32>
    %11 = arith.maximumf %9, %10 : vector<8x64xf32>
    %c0_7 = arith.constant 0 : index
    %c0_8 = arith.constant 0 : index
    %12 = vector.load %arg3[%c0_7, %c0_8] : memref<320x128xbf16, #tpu.memory_space<vmem>>, vector<64x128xbf16>
    %13 = arith.truncf %11 : vector<8x64xf32> to vector<8x64xbf16>
    %cst_9 = arith.constant dense<0.000000e+00> : vector<8x128xf32>
    %14 = tpu.matmul %13, %12, %cst_9 {dimension_numbers = #tpu.dot_dimension_numbers<[1], [0], [0], [1], [0, 0, 1, 1], [], []>} : vector<8x64xbf16>, vector<64x128xbf16>, vector<8x128xf32> -> vector<8x128xf32>
    %15 = vector.extract_strided_slice %3 {offsets = [0, 0], sizes = [8, 128], strides = [1, 1]} : vector<8x384xf32> to vector<8x128xf32>
    %16 = arith.addf %14, %15 : vector<8x128xf32>
    %cst_10 = arith.constant 0.000000e+00 : f32
    %17 = vector.broadcast %cst_10 : f32 to vector<8x128xf32>
    %18 = arith.maximumf %16, %17 : vector<8x128xf32>
    %c64 = arith.constant 64 : index
    %c0_11 = arith.constant 0 : index
    %19 = vector.load %arg3[%c64, %c0_11] : memref<320x128xbf16, #tpu.memory_space<vmem>>, vector<128x128xbf16>
    %20 = arith.truncf %18 : vector<8x128xf32> to vector<8x128xbf16>
    %cst_12 = arith.constant dense<0.000000e+00> : vector<8x128xf32>
    %21 = tpu.matmul %20, %19, %cst_12 {dimension_numbers = #tpu.dot_dimension_numbers<[1], [0], [0], [1], [0, 0, 1, 1], [], []>} : vector<8x128xbf16>, vector<128x128xbf16>, vector<8x128xf32> -> vector<8x128xf32>
    %22 = vector.extract_strided_slice %3 {offsets = [0, 128], sizes = [8, 128], strides = [1, 1]} : vector<8x384xf32> to vector<8x128xf32>
    %23 = arith.addf %21, %22 : vector<8x128xf32>
    %cst_13 = arith.constant 0.000000e+00 : f32
    %24 = vector.broadcast %cst_13 : f32 to vector<8x128xf32>
    %25 = arith.maximumf %23, %24 : vector<8x128xf32>
    %c192 = arith.constant 192 : index
    %c0_14 = arith.constant 0 : index
    %26 = vector.load %arg3[%c192, %c0_14] : memref<320x128xbf16, #tpu.memory_space<vmem>>, vector<128x128xbf16>
    %27 = arith.truncf %25 : vector<8x128xf32> to vector<8x128xbf16>
    %cst_15 = arith.constant dense<0.000000e+00> : vector<8x128xf32>
    %28 = tpu.matmul %27, %26, %cst_15 {dimension_numbers = #tpu.dot_dimension_numbers<[1], [0], [0], [1], [0, 0, 1, 1], [], []>} : vector<8x128xbf16>, vector<128x128xbf16>, vector<8x128xf32> -> vector<8x128xf32>
    %29 = vector.extract_strided_slice %3 {offsets = [0, 256], sizes = [8, 128], strides = [1, 1]} : vector<8x384xf32> to vector<8x128xf32>
    %30 = arith.addf %28, %29 : vector<8x128xf32>
    %c0_16 = arith.constant 0 : index
    %c0_17 = arith.constant 0 : index
    %31 = vector.load %arg5[%c0_16, %c0_17] : memref<8x128xf32, #tpu.memory_space<vmem>>, vector<8x128xf32>
    tpu.vector_store %arg5[%c0_16, %c0_17], %30 {strides = array<i32>} : memref<8x128xf32, #tpu.memory_space<vmem>>, vector<8x128xf32>,
    return
  }
  func.func @transform_0(%arg0: i32) -> (i32, i32) {
    %c0_i32 = arith.constant 0 : i32
    %c0_i32_0 = arith.constant 0 : i32
    return %arg0, %c0_i32 : i32, i32
  }
  func.func @transform_1(%arg0: i32) -> (i32, i32) {
    %c0_i32 = arith.constant 0 : i32
    %c0_i32_0 = arith.constant 0 : i32
    %c0_i32_1 = arith.constant 0 : i32
    return %c0_i32, %c0_i32_0 : i32, i32
  }
  func.func @transform_2(%arg0: i32) -> (i32, i32) {
    %c0_i32 = arith.constant 0 : i32
    %c0_i32_0 = arith.constant 0 : i32
    %c0_i32_1 = arith.constant 0 : i32
    return %c0_i32, %c0_i32_0 : i32, i32
  }
  func.func @transform_3(%arg0: i32) -> (i32, i32) {
    %c0_i32 = arith.constant 0 : i32
    %c0_i32_0 = arith.constant 0 : i32
    %c0_i32_1 = arith.constant 0 : i32
    return %c0_i32, %c0_i32_0 : i32, i32
  }
  func.func @transform_4(%arg0: i32) -> (i32, i32) {
    %c0_i32 = arith.constant 0 : i32
    %c0_i32_0 = arith.constant 0 : i32
    return %arg0, %c0_i32 : i32, i32
  }
}

</mosaic_0001>

<bundles_post_ra>
// kernel: tpu_custom_call.1
= control target key start
LH: loop header
LB: loop body
LE: loop exit
PB: predicated region body
PF: predicated region fallthrough
CT: control target
= control target key end

     0   :  { %9 = vsyncpa [#allocation3], 0  ;;  %s798_s0 = inlined_call_operand.hbm [shape: f32[8,64], index: 0, kind: input, shape index: {}]   ;;  %s799_s1 = inlined_call_operand.hbm [shape: f32[8,64], index: 1, kind: input, shape index: {}]   ;;  %s800_s2 = inlined_call_operand.hbm [shape: bf16[320,128], index: 2, kind: input, shape index: {}]   ;;  %s801_s3 = inlined_call_operand.hbm [shape: bf16[64,384], index: 3, kind: input, shape index: {}]   ;;  %s802_s4 = inlined_call_operand.hbm [shape: f32[8,128], index: 4, kind: output, shape index: {}]  }
   0x1   :  { %10 = vsyncpa [#allocation6], 0 }
   0x2   :  { %11 = vsyncpa [#allocation9], 0  ;;  %s29_s17 = sshll.u32 %s799_s1, 4  ;;  %s30_s17 = int_to_ptr.hbm [resolvable:$true] %s29_s17 }
   0x3   :  { %12 = vsyncpa [#allocation4], 0  ;;  %s740_s18 = smov [#allocation5]   ;;  %s18_s22 = sshll.u32 %s798_s0, 4  ;;  %s19_s22 = int_to_ptr.hbm [resolvable:$true] %s18_s22 }
   0x4   :  { %s31_s19 = sshll.u32 %s740_s18, 4  ;;  %s741_s23 = smov [#allocation2]   ;;  %s32_s19 = int_to_ptr.vmem [resolvable:$true] %s31_s19 }
   0x5   :  { %34 = dma.hbm_to_vmem [thread:$0]  %s30_s17, 128, %s32_s19, [#allocation6]  }
   0x6   :  { %s20_s24 = sshll.u32 %s741_s23, 4  ;;  %s39_s27 = sshll.u32 %s800_s2, 4  ;;  %s21_s24 = int_to_ptr.vmem [resolvable:$true] %s20_s24  ;;  %s40_s27 = int_to_ptr.hbm [resolvable:$true] %s39_s27 }
   0x7   :  { %23 = dma.hbm_to_vmem [thread:$0]  %s19_s22, 128, %s21_s24, [#allocation3]  }
   0x8   :  { %s742_s1 = smov [#allocation7]   ;;  %s52_s5 = sshll.u32 %s801_s3, 4  ;;  %s53_s5 = int_to_ptr.hbm [resolvable:$true] %s52_s5 }
   0x9   :  { %s41_s28 = sshll.u32 %s742_s1, 4  ;;  %s743_s6 = smov 64   ;;  %s42_s28 = int_to_ptr.vmem [resolvable:$true] %s41_s28 }
   0xa   :  { %s744_s0 = smov 4   ;;  %s745_s7 = smov [#allocation8]  }
   0xb   :  { %47 = dma.hbm_to_vmem [thread:$0]  %s40_s27, 2560, %s42_s28, [#allocation6], %s743_s6, %s743_s6, %s744_s0  }
   0xc   :  { %s54_s8 = sshll.u32 %s745_s7, 4  ;;  %s746_s9 = smov 192   ;;  %s55_s8 = int_to_ptr.vmem [resolvable:$true] %s54_s8 }
   0xd   :  { %s747_s10 = smov 12  }
   0xe   :  { %60 = dma.hbm_to_vmem [thread:$0]  %s53_s5, 1536, %s55_s8, [#allocation9], %s746_s9, %s746_s9, %s747_s10  }
   0xf   :  { %732 = dma.done.wait [#allocation3], 128  }
  0x10   :  { %733 = vsyncadd [#allocation3], 4294967168 }
  0x11   :  { %734 = dma.done.wait [#allocation6], 2688  }
  0x12   :  { %735 = vsyncadd [#allocation6], 4294964608 }
  0x13   :  { %736 = dma.done.wait [#allocation9], 1536  }
  0x14   :  { %737 = vsyncadd [#allocation9], 4294965760  ;;  %v578_v0 = vld [vmem:[#allocation8 + $0x4c] sm:$0xf]  ;;  %v477_v1 = vld [vmem:[#allocation8 + $0x54] sm:$0xf0] }
  0x15   :  { %v575_v2 = vld [vmem:[#allocation8 + $0x34] sm:$0xf]  ;;  %v480_v3 = vor.u32 %v578_v0, %v477_v1  ;;  %v465_v4 = vld [vmem:[#allocation8 + $0x3c] sm:$0xf0]  ;;  %v475_v5 = vld [vmem:[#allocation8 + $0x48] sm:$0xf] }
  0x16   :  { %v579_v6 = vld [vmem:[#allocation8 + $0x50] sm:$0xf0]  ;;  %v463_v8 = vld [vmem:[#allocation8 + $0x30] sm:$0xf]  ;;  %v468_v9 = vor.u32 %v575_v2, %v465_v4  ;;  %v576_v10 = vld [vmem:[#allocation8 + $0x38] sm:$0xf0] }
  0x17   :  { %v476_v7 = vor.u32 %v579_v6, %v475_v5  ;;  %181 = vmatpush.bf16.msra.mxu3 %v480_v3  ;;  %v572_v11 = vld [vmem:[#allocation8 + $0x1c] sm:$0xf]  ;;  %v453_v12 = vld [vmem:[#allocation8 + $0x24] sm:$0xf0]  ;;  %v464_v13 = vor.u32 %v576_v10, %v463_v8  ;;  %v451_v14 = vld [vmem:[#allocation8 + $0x18] sm:$0xf] }
  0x18   :  { %v573_v15 = vld [vmem:[#allocation8 + $0x20] sm:$0xf0]  ;;  %v456_v16 = vor.u32 %v572_v11, %v453_v12  ;;  %v441_v18 = vld [vmem:[#allocation8 + $0xc] sm:$0xf0]  ;;  %v592_v20 = vld [vmem:[#allocation7 + $0x58] sm:$0xff]  ;;  %vm160_vm0 = vcmask 523264  }
  0x19   :  { %168 = vmatpush.bf16.msra.mxu2 %v476_v7  ;;  %v569_v17 = vld [vmem:[#allocation8 + $0x4] sm:$0xf]  ;;  %v452_v19 = vor.u32 %v573_v15, %v451_v14  ;;  %v439_v21 = vld [vmem:[#allocation8] sm:$0xf]  ;;  %v570_v22 = vld [vmem:[#allocation8 + $0x8] sm:$0xf0]  ;;  %325 = vmatpush.bf16.msra.mxu0 %v592_v20 }
  0x1a   :  { %v591_v23 = vld [vmem:[#allocation7 + $0x50] sm:$0xff]  ;;  %v444_v24 = vor.u32 %v569_v17, %v441_v18  ;;  %v584_v26 = vld [vmem:[#allocation7 + $0x18] sm:$0xff]  ;;  %v440_v27 = vor.u32 %v570_v22, %v439_v21  ;;  %v582_v33 = vld [vmem:[#allocation7 + $0x8] sm:$0xff]  ;;  %s748_s2 = smov [#allocation10]   ;;  %s425_s13 = sshll.u32 %s802_s4, 4  ;;  %s426_s13 = int_to_ptr.hbm [resolvable:$true] %s425_s13 }
  0x1b   :  { %182 = vmatpush.bf16.msra.mxu3 %v468_v9  ;;  %v78_v25 = vld [vmem:[#allocation2] sm:$0xff]  ;;  %v610_v29 = vld [vmem:[#allocation5] ss:$0 sm:$0xff]  ;;  %v611_v32 = vld [vmem:[#allocation5 + $0x1] ss:$0 sm:$0xff]  ;;  %s423_s3 = sshll.u32 %s748_s2, 4  ;;  %s424_s3 = int_to_ptr.vmem [resolvable:$true] %s423_s3 }
  0x1c   :  { %v786_v28 = vpack.c.bf16 %v78_v25, %v78_v25  ;;  %v583_v30 = vld [vmem:[#allocation7 + $0x10] sm:$0xff]  ;;  %v205_v31 = vmul.f32 %v610_v29, %v78_v25  ;;  %v581_v35 = vld [vmem:[#allocation7] sm:$0xff]  ;;  %v590_v38 = vld [vmem:[#allocation7 + $0x48] sm:$0xff] }
  0x1d   :  { %169 = vmatpush.bf16.msra.mxu2 %v464_v13  ;;  %326 = vmatpush.bf16.msra.mxu0 %v591_v23  ;;  %v589_v39 = vld [vmem:[#allocation7 + $0x40] sm:$0xff]  ;;  %v588_v40 = vld [vmem:[#allocation7 + $0x38] sm:$0xff]  ;;  %v587_v41 = vld [vmem:[#allocation7 + $0x30] sm:$0xff] }
  0x1e   :  { %v208_v34 = vadd.f32 %v611_v32, %v205_v31  ;;  %v586_v42 = vld [vmem:[#allocation7 + $0x28] sm:$0xff]  ;;  %v585_v43 = vld [vmem:[#allocation7 + $0x20] sm:$0xff]  ;;  %v600_v44 = vld [vmem:[#allocation7 + $0x98] sm:$0xff] }
  0x1f   :  { %183 = vmatpush.bf16.msra.mxu3 %v456_v16  ;;  %v483_v45 = vld [vmem:[#allocation8 + $0x50] sm:$0xf]  ;;  %v580_v46 = vld [vmem:[#allocation8 + $0x58] sm:$0xf0]  ;;  %v471_v48 = vld [vmem:[#allocation8 + $0x38] sm:$0xf]  ;;  %404 = vmatpush.bf16.msra.mxu1 %v600_v44 }
  0x20   :  { %v209_v36 = vmax.f32 %v208_v34, 0.0  ;;  %v484_v47 = vor.u32 %v580_v46, %v483_v45  ;;  %v577_v49 = vld [vmem:[#allocation8 + $0x40] sm:$0xf0]  ;;  %v599_v50 = vld [vmem:[#allocation7 + $0x90] sm:$0xff]  ;;  %v459_v52 = vld [vmem:[#allocation8 + $0x20] sm:$0xf] }
  0x21   :  { %170 = vmatpush.bf16.msra.mxu2 %v452_v19  ;;  %327 = vmatpush.bf16.msra.mxu0 %v590_v38  ;;  %v472_v51 = vor.u32 %v577_v49, %v471_v48  ;;  %v574_v53 = vld [vmem:[#allocation8 + $0x28] sm:$0xf0]  ;;  %v447_v57 = vld [vmem:[#allocation8 + $0x8] sm:$0xf]  ;;  %v571_v58 = vld [vmem:[#allocation8 + $0x10] sm:$0xf0] }
  0x22   :  { %v218_v37 = vpack.c.bf16 %v209_v36, %v209_v36  ;;  %v598_v54 = vld [vmem:[#allocation7 + $0x88] sm:$0xff]  ;;  %v460_v55 = vor.u32 %v574_v53, %v459_v52  ;;  %v597_v60 = vld [vmem:[#allocation7 + $0x80] sm:$0xff]  ;;  %v448_v61 = vor.u32 %v571_v58, %v447_v57  ;;  %v596_v62 = vld [vmem:[#allocation7 + $0x78] sm:$0xff] }
  0x23   :  { %184 = vmatpush.bf16.msra.mxu3 %v444_v24  ;;  %405 = vmatpush.bf16.msra.mxu1 %v599_v50  ;;  %v595_v1 = vld [vmem:[#allocation7 + $0x70] sm:$0xff]  ;;  %v594_v7 = vld [vmem:[#allocation7 + $0x68] sm:$0xff]  ;;  %v593_v8 = vld [vmem:[#allocation7 + $0x60] sm:$0xff] }
  0x25   :  { %171 = vmatpush.bf16.msra.mxu2 %v440_v27  ;;  %328 = vmatpush.bf16.msra.mxu0 %v589_v39 }
  0x26   :  { %486 = vmatmul.msk.bf16.vlgmr.msra.gmra.mxu3 %vm160_vm0, %v786_v28 }
  0x27   :  { %250 = vmatpush.bf16.msrb.mxu3 %v584_v26  ;;  %406 = vmatpush.bf16.msra.mxu1 %v598_v54 }
  0x28   :  { %485 = vmatmul.msk.bf16.vlgmr.msra.gmra.mxu2 %vm160_vm0, %v786_v28 }
  0x29   :  { %329 = vmatpush.bf16.msra.mxu0 %v588_v40  ;;  %194 = vmatpush.bf16.msrb.mxu2 %v484_v47 }
  0x2b   :  { %251 = vmatpush.bf16.msrb.mxu3 %v583_v30  ;;  %407 = vmatpush.bf16.msra.mxu1 %v597_v60 }
  0x2d   :  { %330 = vmatpush.bf16.msra.mxu0 %v587_v41  ;;  %195 = vmatpush.bf16.msrb.mxu2 %v472_v51 }
  0x2f   :  { %252 = vmatpush.bf16.msrb.mxu3 %v582_v33  ;;  %408 = vmatpush.bf16.msra.mxu1 %v596_v62 }
  0x31   :  { %331 = vmatpush.bf16.msra.mxu0 %v586_v42  ;;  %196 = vmatpush.bf16.msrb.mxu2 %v460_v55 }
  0x33   :  { %253 = vmatpush.bf16.msrb.mxu3 %v581_v35  ;;  %409 = vmatpush.bf16.msra.mxu1 %v595_v1 }
  0x35   :  { %332 = vmatpush.bf16.msra.mxu0 %v585_v43  ;;  %197 = vmatpush.bf16.msrb.mxu2 %v448_v61 }
  0x36   :  { %504 = vmatmul.msk.bf16.vlgmr.msrb.gmra.mxu3 %vm160_vm0, %v218_v37 }
  0x37   :  { %410 = vmatpush.bf16.msra.mxu1 %v594_v7 }
  0x38   :  { %487 = vmatmul.msk.bf16.vlgmr.msrb.gmra.mxu2 %vm160_vm0, %v786_v28 }
  0x3b   :  { %411 = vmatpush.bf16.msra.mxu1 %v593_v8 }
  0xa9   :  { %v186_v56 = vpop.f32.mrf.mxu3 }
  0xab   :  { %v173_v59 = vpop.f32.mrf.mxu2 }
  0xb1   :  { %v188_v63 = vpop.f32.mrf.mxu3 }
  0xb3   :  { %v175_v0 = vpop.f32.mrf.mxu2 }
  0xb9   :  { %v255_v2 = vpop.f32.mrf.mxu3 }
  0xba   :  { %v256_v3 = vadd.f32 %v255_v2, %v173_v59 }
  0xbb   :  { %v199_v9 = vpop.f32.mrf.mxu2 }
  0xbc   :  { %v259_v4 = vmax.f32 %v256_v3, 0.0 }
  0xbe   :  { %v276_v5 = vpack.c.bf16 %v259_v4, %v259_v4 }
  0xc0   :  { %333 = vmatmul.bf16.vlgmr.msra.gmra.mxu0 %v276_v5 }
  0xc1   :  { %v257_v6 = vpop.f32.mrf.mxu3 }
  0xc3   :  { %v201_v12 = vpop.f32.mrf.mxu2 }
 0x13d   :  { %v334_v10 = vpop.f32.mrf.mxu0 }
 0x13e   :  { %v335_v11 = vadd.f32 %v334_v10, %v186_v56 }
 0x140   :  { %v338_v13 = vmax.f32 %v335_v11, 0.0 }
 0x142   :  { %v355_v14 = vpack.c.bf16 %v338_v13, %v338_v13 }
 0x144   :  { %412 = vmatmul.bf16.vlgmr.msra.gmra.mxu1 %v355_v14 }
 0x145   :  { %v336_v15 = vpop.f32.mrf.mxu0 }
 0x1c1   :  { %v413_v16 = vpop.f32.mrf.mxu1 }
 0x1c2   :  { %v414_v17 = vadd.f32 %v413_v16, %v199_v9 }
 0x1c4   :  { %417 = vst [vmem:[#allocation10] sm:$0xff] %v414_v17 }
 0x1c5   :  { %428 = dma.vmem_to_hbm [thread:$0]  %s424_s3, 128, %s426_s13, [#allocation4]  }
 0x1c9   :  { %v415_v18 = vpop.f32.mrf.mxu1 }
 0x1ca   :  { %738 = dma.done.wait [#allocation4], 128  }
 0x1cb   :  { %739 = vsyncadd [#allocation4], 4294967168 }
 0x1cc   :  { %433 = vsyncpa [#allocation3], 1 }
 0x1cd   :  { %434 = vsyncpa [#allocation6], 1 }
 0x1ce   :  { %435 = vsyncpa [#allocation9], 1 }
 0x1cf   :  { %436 = vsyncpa [#allocation4], 1 }

</bundles_post_ra>
